<compile_context>
chip_gen: v7x
topology: tpu7x:2x2x1
jax: 0.10.0
libtpu: 0.0.40
codegen_flags: <defaults>
</compile_context>

<pallas_src>
import numpy as np
import jax
import jax.numpy as jnp
from jax.experimental import pallas as pl
from jax.experimental.pallas import tpu as pltpu

D_MODEL = 7        # output_layer.weight = [[0,0,0,0,0,0,1]]  =>  d_model == 7
ALPHABET = 3       # exact_word_embedding = eye(3, d_model)
FFN_HIDDEN = 4
LANES = 128        # TPU lane width; feature dim padded 7 -> 128


def _make_kernel(n, n_pad):
    inv_n = float(1.0 / n)

    def kernel(tok_ref, out_ref):
        # tok_ref : (n_pad, 1) int32, padding rows hold -1 (no one-hot match => zero row)
        # out_ref : (1, LANES) f32, lane 0 = z, lane 1 = logsigmoid(z)
        tok = tok_ref[...]
        row = jax.lax.broadcasted_iota(jnp.int32, (n_pad, LANES), 0)
        col = jax.lax.broadcasted_iota(jnp.int32, (n_pad, LANES), 1)
        lane = jax.lax.broadcasted_iota(jnp.int32, (1, LANES), 1)

        # --- x = exact_word_embedding[w] + pos_encoding(len(w)) -----------------------
        # eye(3, d_model) gather == one-hot compare; pos encoding flags (row 0, feat 3).
        x = (col == tok).astype(jnp.float32)
        x = x + jnp.logical_and(row == 0, col == 3).astype(jnp.float32)

        # --- encoder: single-head self-attention + residual ---------------------------
        # Wq = Wk = 0  =>  scores == 0  =>  softmax exactly uniform over the n real rows,
        # so the attention output row is the column mean of v = x @ Wv, with Wv routing
        # feature 1 -> 4 and feature 3 -> 5; Wo = I.  Padding rows contribute zero.
        colsum = jnp.sum(x, axis=0, keepdims=True)                                  # (1,L)
        c1 = jnp.sum(jnp.where(lane == 1, colsum, 0.0), axis=1, keepdims=True)      # (1,1) #1(w)
        p0 = jnp.sum(jnp.where(lane == 3, colsum, 0.0), axis=1, keepdims=True)      # (1,1) = 1
        attn = (jnp.where(col == 4, c1 * inv_n, 0.0)
                + jnp.where(col == 5, p0 * inv_n, 0.0))                             # (n_pad,L)
        x = x + attn

        # --- encoder: position-wise ReLU FFN + residual -------------------------------
        # W1 hidden units: relu(x4 - x5), relu(x5 - x4), relu(x5); W2 writes
        # -2*h0 - 2*h1 + h2 onto feature 6; biases are zero.
        x4 = jnp.sum(jnp.where(col == 4, x, 0.0), axis=1, keepdims=True)            # (n_pad,1)
        x5 = jnp.sum(jnp.where(col == 5, x, 0.0), axis=1, keepdims=True)            # (n_pad,1)
        h0 = jnp.maximum(x4 - x5, 0.0)
        h1 = jnp.maximum(x5 - x4, 0.0)
        h2 = jnp.maximum(x5, 0.0)
        y = x + jnp.where(col == 6, -2.0 * (h0 + h1) + h2, 0.0)

        # --- z = output_layer(y[0]) with weight e_6, bias 0  =>  z = y[0, 6] ----------
        z = jnp.sum(jnp.where(jnp.logical_and(row == 0, col == 6), y, 0.0),
                    axis=1, keepdims=True)                                          # (n_pad,1)
        z = jnp.sum(z, axis=0, keepdims=True)                                       # (1,1)

        # overflow-safe log-sigmoid: min(z, 0) - log1p(exp(-|z|))
        logsig = jnp.minimum(z, 0.0) - jnp.log1p(jnp.exp(-jnp.abs(z)))

        out_ref[...] = (jnp.where(lane == 0, z, 0.0)
                        + jnp.where(lane == 1, logsig, 0.0))

    return kernel


def one_exact_transformer_forward(w_tokens):
    """w_tokens: int array of token ids in {0,1,2}, shape (n,).
    Returns (accepted: bool, logsigmoid(z): float, z: float)."""
    w_np = np.asarray(jax.device_get(w_tokens)).astype(np.int32).reshape(-1)
    n = int(w_np.shape[0])
    n_pad = max(8, ((n + 7) // 8) * 8)

    tok = np.full((n_pad, 1), -1, dtype=np.int32)   # pad rows: invalid token -> zero embedding
    tok[:n, 0] = w_np

    out = pl.pallas_call(
        _make_kernel(n, n_pad),
        out_shape=jax.ShapeDtypeStruct((1, LANES), jnp.float32),
        in_specs=[pl.BlockSpec(memory_space=pltpu.MemorySpace.VMEM)],
        out_specs=pl.BlockSpec(memory_space=pltpu.MemorySpace.VMEM),
    )(jnp.asarray(tok))

    out = jax.block_until_ready(out)
    z_val = float(out[0, 0])
    logsig_val = float(out[0, 1])
    return bool(z_val > 0.0), logsig_val, z_val


def reference_forward(w_np):
    """Pure-numpy reference of the full (unfused) exact construction."""
    n = w_np.shape[0]
    emb = np.eye(ALPHABET, D_MODEL, dtype=np.float32)            # exact_word_embedding
    pos = np.zeros((n, D_MODEL), np.float32)
    pos[0, 3] = 1.0                                              # PositionEncodingOneExact

    wq = np.zeros((D_MODEL, D_MODEL), np.float32)
    wk = np.zeros((D_MODEL, D_MODEL), np.float32)
    wv = np.zeros((D_MODEL, D_MODEL), np.float32)
    wv[1, 4] = 1.0
    wv[3, 5] = 1.0
    wo = np.eye(D_MODEL, dtype=np.float32)
    w1 = np.zeros((D_MODEL, FFN_HIDDEN), np.float32)
    w1[4, 0], w1[5, 0] = 1.0, -1.0
    w1[4, 1], w1[5, 1] = -1.0, 1.0
    w1[5, 2] = 1.0
    w2 = np.zeros((FFN_HIDDEN, D_MODEL), np.float32)
    w2[0, 6], w2[1, 6], w2[2, 6] = -2.0, -2.0, 1.0
    w_out = np.array([[0, 0, 0, 0, 0, 0, 1]], np.float32)
    b_out = np.array([0.0], np.float32)

    x = emb[w_np] + pos
    q, k, v = x @ wq, x @ wk, x @ wv
    s = (q @ k.T) / np.sqrt(np.float32(D_MODEL))
    s = s - s.max(axis=-1, keepdims=True)
    p = np.exp(s)
    p = p / p.sum(axis=-1, keepdims=True)
    x = x + (p @ v) @ wo
    h = np.maximum(x @ w1, 0.0)
    y = x + h @ w2
    z = float(y[0] @ w_out[0] + b_out[0])
    logsig = float(np.minimum(z, 0.0) - np.log1p(np.exp(-abs(z))))
    return z, logsig


if __name__ == "__main__":
    key = jax.random.PRNGKey(0)
    n = 8
    # deterministic example word over {0,1} (alphabet size 3; symbol 2 unused by the word)
    w = jax.random.randint(key, (n,), 0, 2, dtype=jnp.int32)

    accepted, logsig_val, z_val = one_exact_transformer_forward(w)

    w_np = np.asarray(jax.device_get(w)).astype(np.int32)
    z_ref, logsig_ref = reference_forward(w_np)
    c1 = int((w_np == 1).sum())

    assert accepted == (c1 == 1), (accepted, c1)
    assert np.isclose(z_val, z_ref, atol=1e-5), (z_val, z_ref)
    assert np.isclose(logsig_val, logsig_ref, atol=1e-5), (logsig_val, logsig_ref)

    print("KERNEL_OK")
</pallas_src>

<mosaic_0001>
module attributes {stable_mosaic.version = 11 : i64} {
  func.func @kernel(%arg0: memref<8x1xi32, #tpu.memory_space<vmem>>, %arg1: memref<1x128xf32, #tpu.memory_space<vmem>>) attributes {dimension_semantics = [], scalar_prefetch = 0 : i64, scratch_operands = 0 : i64, tpu.core_type = #tpu.core_type<tc>} {
    %c0 = arith.constant 0 : index
    %c0_0 = arith.constant 0 : index
    %0 = vector.load %arg0[%c0, %c0_0] : memref<8x1xi32, #tpu.memory_space<vmem>>, vector<8x1xi32>
    %1 = tpu.iota {dimensions = array<i32: 0>} : vector<8x128xi32>
    %2 = tpu.iota {dimensions = array<i32: 1>} : vector<8x128xi32>
    %3 = tpu.iota {dimensions = array<i32: 1>} : vector<1x128xi32>
    %4 = vector.broadcast %0 : vector<8x1xi32> to vector<8x128xi32>
    %5 = arith.cmpi eq, %2, %4 : vector<8x128xi32>
    %6 = arith.extui %5 : vector<8x128xi1> to vector<8x128xi32>
    %7 = arith.sitofp %6 : vector<8x128xi32> to vector<8x128xf32>
    %c0_i32 = arith.constant 0 : i32
    %8 = vector.broadcast %c0_i32 : i32 to vector<8x128xi32>
    %9 = arith.cmpi eq, %1, %8 : vector<8x128xi32>
    %c3_i32 = arith.constant 3 : i32
    %10 = vector.broadcast %c3_i32 : i32 to vector<8x128xi32>
    %11 = arith.cmpi eq, %2, %10 : vector<8x128xi32>
    %12 = arith.andi %9, %11 : vector<8x128xi1>
    %13 = arith.extui %12 : vector<8x128xi1> to vector<8x128xi32>
    %14 = arith.sitofp %13 : vector<8x128xi32> to vector<8x128xf32>
    %15 = arith.addf %7, %14 : vector<8x128xf32>
    %cst = arith.constant dense<0.000000e+00> : vector<128xf32>
    %16 = vector.multi_reduction <add>, %15, %cst [0] : vector<8x128xf32> to vector<128xf32>
    %17 = vector.shape_cast %16 : vector<128xf32> to vector<1x128xf32>
    %c1_i32 = arith.constant 1 : i32
    %18 = vector.broadcast %c1_i32 : i32 to vector<1x128xi32>
    %19 = arith.cmpi eq, %3, %18 : vector<1x128xi32>
    %cst_1 = arith.constant 0.000000e+00 : f32
    %20 = vector.broadcast %cst_1 : f32 to vector<1x128xf32>
    %21 = arith.select %19, %17, %20 : vector<1x128xi1>, vector<1x128xf32>
    %cst_2 = arith.constant dense<0.000000e+00> : vector<1xf32>
    %22 = vector.multi_reduction <add>, %21, %cst_2 [1] : vector<1x128xf32> to vector<1xf32>
    %23 = vector.shape_cast %22 : vector<1xf32> to vector<1x1xf32>
    %c3_i32_3 = arith.constant 3 : i32
    %24 = vector.broadcast %c3_i32_3 : i32 to vector<1x128xi32>
    %25 = arith.cmpi eq, %3, %24 : vector<1x128xi32>
    %cst_4 = arith.constant 0.000000e+00 : f32
    %26 = vector.broadcast %cst_4 : f32 to vector<1x128xf32>
    %27 = arith.select %25, %17, %26 : vector<1x128xi1>, vector<1x128xf32>
    %cst_5 = arith.constant dense<0.000000e+00> : vector<1xf32>
    %28 = vector.multi_reduction <add>, %27, %cst_5 [1] : vector<1x128xf32> to vector<1xf32>
    %29 = vector.shape_cast %28 : vector<1xf32> to vector<1x1xf32>
    %c4_i32 = arith.constant 4 : i32
    %30 = vector.broadcast %c4_i32 : i32 to vector<8x128xi32>
    %31 = arith.cmpi eq, %2, %30 : vector<8x128xi32>
    %cst_6 = arith.constant 1.250000e-01 : f32
    %32 = vector.broadcast %cst_6 : f32 to vector<1x1xf32>
    %33 = arith.mulf %23, %32 : vector<1x1xf32>
    %cst_7 = arith.constant 0.000000e+00 : f32
    %34 = vector.shape_cast %33 : vector<1x1xf32> to vector<1x1xf32>
    %35 = vector.broadcast %34 : vector<1x1xf32> to vector<8x128xf32>
    %36 = vector.broadcast %cst_7 : f32 to vector<8x128xf32>
    %37 = arith.select %31, %35, %36 : vector<8x128xi1>, vector<8x128xf32>
    %c5_i32 = arith.constant 5 : i32
    %38 = vector.broadcast %c5_i32 : i32 to vector<8x128xi32>
    %39 = arith.cmpi eq, %2, %38 : vector<8x128xi32>
    %cst_8 = arith.constant 1.250000e-01 : f32
    %40 = vector.broadcast %cst_8 : f32 to vector<1x1xf32>
    %41 = arith.mulf %29, %40 : vector<1x1xf32>
    %cst_9 = arith.constant 0.000000e+00 : f32
    %42 = vector.shape_cast %41 : vector<1x1xf32> to vector<1x1xf32>
    %43 = vector.broadcast %42 : vector<1x1xf32> to vector<8x128xf32>
    %44 = vector.broadcast %cst_9 : f32 to vector<8x128xf32>
    %45 = arith.select %39, %43, %44 : vector<8x128xi1>, vector<8x128xf32>
    %46 = arith.addf %37, %45 : vector<8x128xf32>
    %47 = arith.addf %15, %46 : vector<8x128xf32>
    %c4_i32_10 = arith.constant 4 : i32
    %48 = vector.broadcast %c4_i32_10 : i32 to vector<8x128xi32>
    %49 = arith.cmpi eq, %2, %48 : vector<8x128xi32>
    %cst_11 = arith.constant 0.000000e+00 : f32
    %50 = vector.broadcast %cst_11 : f32 to vector<8x128xf32>
    %51 = arith.select %49, %47, %50 : vector<8x128xi1>, vector<8x128xf32>
    %cst_12 = arith.constant dense<0.000000e+00> : vector<8xf32>
    %52 = vector.multi_reduction <add>, %51, %cst_12 [1] : vector<8x128xf32> to vector<8xf32>
    %53 = vector.shape_cast %52 : vector<8xf32> to vector<8x1xf32>
    %c5_i32_13 = arith.constant 5 : i32
    %54 = vector.broadcast %c5_i32_13 : i32 to vector<8x128xi32>
    %55 = arith.cmpi eq, %2, %54 : vector<8x128xi32>
    %cst_14 = arith.constant 0.000000e+00 : f32
    %56 = vector.broadcast %cst_14 : f32 to vector<8x128xf32>
    %57 = arith.select %55, %47, %56 : vector<8x128xi1>, vector<8x128xf32>
    %cst_15 = arith.constant dense<0.000000e+00> : vector<8xf32>
    %58 = vector.multi_reduction <add>, %57, %cst_15 [1] : vector<8x128xf32> to vector<8xf32>
    %59 = vector.shape_cast %58 : vector<8xf32> to vector<8x1xf32>
    %60 = arith.subf %53, %59 : vector<8x1xf32>
    %cst_16 = arith.constant 0.000000e+00 : f32
    %61 = vector.broadcast %cst_16 : f32 to vector<8x1xf32>
    %62 = arith.maximumf %60, %61 : vector<8x1xf32>
    %63 = arith.subf %59, %53 : vector<8x1xf32>
    %cst_17 = arith.constant 0.000000e+00 : f32
    %64 = vector.broadcast %cst_17 : f32 to vector<8x1xf32>
    %65 = arith.maximumf %63, %64 : vector<8x1xf32>
    %cst_18 = arith.constant 0.000000e+00 : f32
    %66 = vector.broadcast %cst_18 : f32 to vector<8x1xf32>
    %67 = arith.maximumf %59, %66 : vector<8x1xf32>
    %c6_i32 = arith.constant 6 : i32
    %68 = vector.broadcast %c6_i32 : i32 to vector<8x128xi32>
    %69 = arith.cmpi eq, %2, %68 : vector<8x128xi32>
    %70 = arith.addf %62, %65 : vector<8x1xf32>
    %cst_19 = arith.constant -2.000000e+00 : f32
    %71 = vector.broadcast %cst_19 : f32 to vector<8x1xf32>
    %72 = arith.mulf %71, %70 : vector<8x1xf32>
    %73 = arith.addf %72, %67 : vector<8x1xf32>
    %cst_20 = arith.constant 0.000000e+00 : f32
    %74 = vector.shape_cast %73 : vector<8x1xf32> to vector<8x1xf32>
    %75 = vector.broadcast %74 : vector<8x1xf32> to vector<8x128xf32>
    %76 = vector.broadcast %cst_20 : f32 to vector<8x128xf32>
    %77 = arith.select %69, %75, %76 : vector<8x128xi1>, vector<8x128xf32>
    %78 = arith.addf %47, %77 : vector<8x128xf32>
    %c0_i32_21 = arith.constant 0 : i32
    %79 = vector.broadcast %c0_i32_21 : i32 to vector<8x128xi32>
    %80 = arith.cmpi eq, %1, %79 : vector<8x128xi32>
    %c6_i32_22 = arith.constant 6 : i32
    %81 = vector.broadcast %c6_i32_22 : i32 to vector<8x128xi32>
    %82 = arith.cmpi eq, %2, %81 : vector<8x128xi32>
    %83 = arith.andi %80, %82 : vector<8x128xi1>
    %cst_23 = arith.constant 0.000000e+00 : f32
    %84 = vector.broadcast %cst_23 : f32 to vector<8x128xf32>
    %85 = arith.select %83, %78, %84 : vector<8x128xi1>, vector<8x128xf32>
    %cst_24 = arith.constant dense<0.000000e+00> : vector<8xf32>
    %86 = vector.multi_reduction <add>, %85, %cst_24 [1] : vector<8x128xf32> to vector<8xf32>
    %87 = vector.shape_cast %86 : vector<8xf32> to vector<8x1xf32>
    %cst_25 = arith.constant dense<0.000000e+00> : vector<1xf32>
    %88 = vector.multi_reduction <add>, %87, %cst_25 [0] : vector<8x1xf32> to vector<1xf32>
    %89 = vector.shape_cast %88 : vector<1xf32> to vector<1x1xf32>
    %cst_26 = arith.constant 0.000000e+00 : f32
    %90 = vector.broadcast %cst_26 : f32 to vector<1x1xf32>
    %91 = arith.minimumf %89, %90 : vector<1x1xf32>
    %92 = math.absf %89 : vector<1x1xf32>
    %cst_27 = arith.constant 0.000000e+00 : f32
    %93 = vector.broadcast %cst_27 : f32 to vector<1x1xf32>
    %94 = arith.subf %93, %92 : vector<1x1xf32>
    %95 = math.exp %94 : vector<1x1xf32>
    %96 = math.log1p %95 : vector<1x1xf32>
    %97 = arith.subf %91, %96 : vector<1x1xf32>
    %c0_i32_28 = arith.constant 0 : i32
    %98 = vector.broadcast %c0_i32_28 : i32 to vector<1x128xi32>
    %99 = arith.cmpi eq, %3, %98 : vector<1x128xi32>
    %cst_29 = arith.constant 0.000000e+00 : f32
    %100 = vector.shape_cast %89 : vector<1x1xf32> to vector<1x1xf32>
    %101 = vector.broadcast %100 : vector<1x1xf32> to vector<1x128xf32>
    %102 = vector.broadcast %cst_29 : f32 to vector<1x128xf32>
    %103 = arith.select %99, %101, %102 : vector<1x128xi1>, vector<1x128xf32>
    %c1_i32_30 = arith.constant 1 : i32
    %104 = vector.broadcast %c1_i32_30 : i32 to vector<1x128xi32>
    %105 = arith.cmpi eq, %3, %104 : vector<1x128xi32>
    %cst_31 = arith.constant 0.000000e+00 : f32
    %106 = vector.shape_cast %97 : vector<1x1xf32> to vector<1x1xf32>
    %107 = vector.broadcast %106 : vector<1x1xf32> to vector<1x128xf32>
    %108 = vector.broadcast %cst_31 : f32 to vector<1x128xf32>
    %109 = arith.select %105, %107, %108 : vector<1x128xi1>, vector<1x128xf32>
    %110 = arith.addf %103, %109 : vector<1x128xf32>
    %c0_32 = arith.constant 0 : index
    %c0_33 = arith.constant 0 : index
    %111 = vector.load %arg1[%c0_32, %c0_33] : memref<1x128xf32, #tpu.memory_space<vmem>>, vector<1x128xf32>
    tpu.vector_store %arg1[%c0_32, %c0_33], %110 {strides = array<i32>} : memref<1x128xf32, #tpu.memory_space<vmem>>, vector<1x128xf32>,
    return
  }
}

</mosaic_0001>

<bundles_post_ra>
// kernel: tpu_custom_call.1
= control target key start
LH: loop header
LB: loop body
LE: loop exit
PB: predicated region body
PF: predicated region fallthrough
CT: control target
= control target key end

     0   :  { %s185_s0 = inlined_call_operand.vmem [shape: s32[8,1], index: 0, kind: input, shape index: {}]   ;;  %s186_s1 = inlined_call_operand.hbm [shape: f32[1,128], index: 1, kind: output, shape index: {}]  }
   0x1   :  { %v9_v0 = vld [vmem:[%s185_s0] sm:$0xff] }
   0x2   :  { %6 = vsyncpa [#allocation3], 0  ;;  %v142_v1 = vmov 0   ;;  %v10_v2 = vlaneseq  ;;  %v143_v6 = vmov 0.0   ;;  %s144_s0 = smov [#allocation2]  }
   0x3   :  { %113 = vset.pattern.permute.xlu0 %v142_v1  ;;  %s100_s8 = sshll.u32 %s144_s0, 4  ;;  %s101_s8 = int_to_ptr.vmem [resolvable:$true] %s100_s8 }
   0x4   :  { %15 = vperm.xlu0 %113, %v9_v0   ;;  %v158_v3 = vand.u32 127, %v10_v2  ;;  %v11_v4 = vshrl.u32 %v10_v2, 7  ;;  %s118_s9 = scalar_lea.vmem %s101_s8, 16  ;;  %s122_s10 = scalar_lea.vmem %s101_s8, 32 }
   0x5   :  { %p119_p0 = scmp.ne.s32.totalorder %s101_s8, %s118_s9  ;;  %p123_p1 = scmp.lt.s32.totalorder %s101_s8, %s101_s8 }
   0x6   :  { %vm20_vm0 = vcmp.eq.s32.totalorder %v11_v4, 0  ;;  %vm21_vm1 = vcmp.eq.s32.totalorder %v158_v3, 3  ;;  %vm32_vm4 = vcmp.eq.s32.totalorder %v158_v3, 1  ;;  %vm42_vm5 = vcmp.eq.s32.totalorder %v158_v3, 5  ;;  %p124_p2 = scmp.lt.s32.totalorder %s122_s10, %s118_s9 }
   0x7   :  { %vm22_vm2 = vmand %vm20_vm0, %vm21_vm1  ;;  %vm39_vm6 = vcmp.eq.s32.totalorder %v158_v3, 4  ;;  %vm58_vm7 = vcmp.eq.s32.totalorder %v158_v3, 6  ;;  %vm89_vm10 = vcmp.eq.s32.totalorder %v158_v3, 0 }
   0x8   :  { %v109_v7 = vsel %vm22_vm2, 1.0, %v143_v6  ;;  %vm64_vm8 = vmand %vm20_vm0, %vm58_vm7  ;;  %p125_p3 = por %p124_p2, %p123_p1 }
   0xa   :  { %p126_p4 = pnand %p125_p3, %p119_p0 }
  0x83   :  { %v16_v5 = vpop.permute.xlu0 %15 }
  0x84   :  { %vm17_vm3 = vcmp.eq.s32.totalorder %v158_v3, %v16_v5 }
  0x85   :  { %v108_v8 = vsel %vm17_vm3, 1.0, %v143_v6 }
  0x86   :  { %v25_v9 = vadd.f32 %v109_v7, %v108_v8 }
  0x88   :  { %v26_v10 = vrot.slane %v25_v9, 4 }
  0x8a   :  { %v27_v11 = vadd.f32 %v26_v10, %v25_v9 }
  0x8c   :  { %v28_v12 = vrot.slane %v27_v11, 2 }
  0x8e   :  { %v29_v13 = vadd.f32 %v28_v12, %v27_v11 }
  0x90   :  { %v30_v14 = vrot.slane %v29_v13, 1 }
  0x92   :  { %v31_v15 = vadd.f32 %v30_v14, %v29_v13 }
  0x94   :  { %v36_v16 = vsel %vm21_vm1, %v31_v15, 0.0  ;;  %v33_v17 = vsel %vm32_vm4, %v31_v15, 0.0 }
  0x95   :  { %37 = vadd.xlane.f32.xlu1 %v36_v16  ;;  %34 = vadd.xlane.f32.xlu0 %v33_v17 }
 0x122   :  { %v38_v18 = vpop.xlane.xlu1 %37  ;;  %v35_v19 = vpop.xlane.xlu0 %34 }
 0x123   :  { %v43_v20 = vmul.f32 0.125, %v38_v18  ;;  %v40_v21 = vmul.f32 0.125, %v35_v19 }
 0x125   :  { %v44_v22 = vsel %vm42_vm5, %v43_v20, 0.0  ;;  %v41_v23 = vsel %vm39_vm6, %v40_v21, 0.0 }
 0x126   :  { %v45_v24 = vadd.f32 %v44_v22, %v41_v23 }
 0x128   :  { %v46_v25 = vadd.f32 %v45_v24, %v25_v9 }
 0x12a   :  { %v47_v26 = vsel %vm39_vm6, %v46_v25, 0.0  ;;  %v50_v27 = vsel %vm42_vm5, %v46_v25, 0.0 }
 0x12b   :  { %48 = vadd.xlane.f32.xlu1 %v47_v26 }
 0x12f   :  { %51 = vadd.xlane.f32.xlu1 %v50_v27 }
 0x1b8   :  { %v49_v28 = vpop.xlane.xlu1 %48 }
 0x1bc   :  { %v52_v29 = vpop.xlane.xlu1 %51 }
 0x1bd   :  { %v53_v30 = vsub.f32 %v49_v28, %v52_v29  ;;  %v55_v31 = vsub.f32 %v52_v29, %v49_v28  ;;  %v57_v35 = vmax.f32 %v52_v29, 0.0 }
 0x1bf   :  { %v54_v32 = vmax.f32 %v53_v30, 0.0  ;;  %v56_v33 = vmax.f32 %v55_v31, 0.0 }
 0x1c1   :  { %v59_v34 = vadd.f32 %v56_v33, %v54_v32 }
 0x1c3   :  { %v60_v36 = vmul.f32 -2.0, %v59_v34 }
 0x1c5   :  { %v61_v37 = vadd.f32 %v60_v36, %v57_v35 }
 0x1c7   :  { %v62_v38 = vsel %vm58_vm7, %v61_v37, 0.0 }
 0x1c8   :  { %v63_v39 = vadd.f32 %v62_v38, %v46_v25 }
 0x1ca   :  { %v65_v40 = vsel %vm64_vm8, %v63_v39, 0.0 }
 0x1cb   :  { %66 = vadd.xlane.f32.xlu1 %v65_v40 }
 0x258   :  { %v67_v41 = vpop.xlane.xlu1 %66 }
 0x259   :  { %v68_v42 = vrot.slane %v67_v41, 4 }
 0x25b   :  { %v69_v43 = vadd.f32 %v68_v42, %v67_v41 }
 0x25d   :  { %v70_v44 = vrot.slane %v69_v43, 2 }
 0x25f   :  { %v71_v45 = vadd.f32 %v70_v44, %v69_v43 }
 0x261   :  { %v72_v46 = vrot.slane %v71_v45, 1 }
 0x263   :  { %v73_v47 = vadd.f32 %v72_v46, %v71_v45 }
 0x265   :  { %v75_v48 = vand.u32 2147483647, %v73_v47  ;;  %v74_v59 = vmin.f32 %v73_v47, 0.0  ;;  %v90_v62 = vsel %vm89_vm10, %v73_v47, 0.0 }
 0x267   :  { %v76_v49 = vsub.f32 0.0, %v75_v48 }
 0x269   :  { %v77_v50 = vmul.f32 1.442695, %v76_v49 }
 0x26b   :  { %114 = vpow2.f32 %v77_v50 }
 0x275   :  { %v115_v51 = vpop.eup %114 }
 0x276   :  { %v79_v52 = vadd.f32 1.0, %v115_v51  ;;  %v82_v53 = vmul.f32 -0.5, %v115_v51  ;;  %v85_v55 = vand.u32 2147483647, %v115_v51 }
 0x278   :  { %116 = vlog2.f32 %v79_v52  ;;  %v83_v54 = vadd.f32 1.0, %v82_v53  ;;  %vm86_vm9 = vcmp.lt.f32.partialorder %v85_v55, 0.0004427343 }
 0x27a   :  { %v84_v58 = vmul.f32 %v115_v51, %v83_v54 }
 0x282   :  { %v117_v56 = vpop.eup %116 }
 0x283   :  { %v81_v57 = vmul.f32 0.6931472, %v117_v56 }
 0x285   :  { %v87_v60 = vsel %vm86_vm9, %v84_v58, %v81_v57 }
 0x286   :  { %v88_v61 = vsub.f32 %v74_v59, %v87_v60 }
 0x288   :  { %v91_v63 = vsel %vm32_vm4, %v88_v61, 0.0 }
 0x289   :  { %v92_v0 = vadd.f32 %v91_v63, %v90_v62 }
 0x28b   :  { %93 = vst [vmem:[#allocation2] sm:$0x1] %v92_v0 }
 0x28c   :  { %129 = shalt.err (!%p126_p4)
}
 0x28d   :  { %s130_s13 = scalar_lea.hbm %s186_s1, 16 }
 0x28e   :  { %p131_p5 = scmp.ne.s32.totalorder %s186_s1, %s130_s13  ;;  %p134_p6 = scmp.lt.u32.totalorder %s130_s13, %s186_s1 }
 0x290   :  { %p136_p7 = pnand %p134_p6, %p131_p5 }
 0x292   :  { %139 = shalt.err (!%p136_p7)
}
 0x293   :  { %103 = dma.vmem_to_hbm [thread:$0]  %s101_s8, 16, %s186_s1, [#allocation3]  }
 0x294   :  { %140 = dma.done.wait [#allocation3], 16  }
 0x295   :  { %141 = vsyncadd [#allocation3], 4294967280 }
 0x296   :  { %107 = vsyncpa [#allocation3], 1 }

</bundles_post_ra>
